<compile_context>
chip_gen: v6e
topology: v6e:2x2x1
jax: 0.10.0
libtpu: 0.0.40
codegen_flags: <defaults>
</compile_context>

<pallas_src>
import jax
import jax.numpy as jnp
from jax.experimental import pallas as pl
from jax.experimental.pallas import tpu as pltpu


def _round_up(a: int, b: int) -> int:
    return ((a + b - 1) // b) * b


def linear_kernel(x_ref, wt_ref, b_ref, h_ref):
    # hidden = x @ W_t + b   (straight MXU matmul, f32 accumulation; W already
    # transposed in the wrapper so no in-kernel relayout).
    h = jnp.dot(x_ref[...], wt_ref[...], preferred_element_type=jnp.float32)
    h = h + b_ref[...]
    # TODO(synk): F.dropout is identity in eval mode (training=False); training-mode
    # dropout would need pltpu.prng_seed + pltpu.stateful_bernoulli here.
    h_ref[...] = h.astype(h_ref.dtype)  # emit bf16 for the bandwidth-bound stage


def aggregate_kernel(adj_ref, h_ref, o_ref, acc_ref):
    # out = ReLU(adj @ hidden), adj streamed in (TM, TK) tiles, K-axis reduction.
    k = pl.program_id(1)

    @pl.when(k == 0)
    def _():
        acc_ref[...] = jnp.zeros_like(acc_ref)

    acc_ref[...] += jnp.dot(
        adj_ref[...], h_ref[...], preferred_element_type=jnp.float32
    )

    @pl.when(k == pl.num_programs(1) - 1)
    def _():
        # Activation (act = ReLU), fused with the final (lane-dense) store.
        o_ref[...] = jnp.maximum(acc_ref[...], 0.0).astype(o_ref.dtype)


def graph_convolution(x, adj, weight, bias):
    """x: (N, Fin), adj: (N, N), weight: (Fout, Fin), bias: (Fout,).

    Returns (ReLU(adj @ (x @ W.T + b)), adj), matching the PyTorch forward.
    """
    n, fin = x.shape
    fout = weight.shape[0]

    # --- tiling / padding choices (conservative: fits v5e/v6e/v7x VMEM) -----
    fout_p = _round_up(fout, 128)            # lane-dense output width
    n128 = _round_up(n, 128)
    tk = min(1024, n128)                     # adj contraction (K) tile
    n_pad = _round_up(n, tk)                 # tk | n_pad
    tm = next(t for t in (512, 256, 128) if tk % t == 0)   # row tile; tm | tk | n_pad

    # --- operand prep: zero-pad, pre-transpose W, cast adj path to bf16 -----
    x_p = jnp.zeros((n_pad, fin), jnp.float32).at[:n, :].set(x.astype(jnp.float32))
    adj_p = jnp.zeros((n_pad, n_pad), jnp.bfloat16).at[:n, :n].set(
        adj.astype(jnp.bfloat16)
    )
    wt_p = jnp.zeros((fin, fout_p), jnp.float32).at[:, :fout].set(
        weight.T.astype(jnp.float32)
    )
    b_p = jnp.zeros((1, fout_p), jnp.float32).at[0, :fout].set(
        bias.astype(jnp.float32)
    )

    # --- 1) hidden = x @ W_t + b   (row-tiled; computed exactly once) -------
    hidden = pl.pallas_call(
        linear_kernel,
        out_shape=jax.ShapeDtypeStruct((n_pad, fout_p), jnp.bfloat16),
        grid=(n_pad // tm,),
        in_specs=[
            pl.BlockSpec((tm, fin), lambda i: (i, 0)),        # x row strip
            pl.BlockSpec((fin, fout_p), lambda i: (0, 0)),    # W_t (resident)
            pl.BlockSpec((1, fout_p), lambda i: (0, 0)),      # bias (resident)
        ],
        out_specs=pl.BlockSpec((tm, fout_p), lambda i: (i, 0)),
        compiler_params=pltpu.CompilerParams(dimension_semantics=("parallel",)),
    )(x_p, wt_p, b_p)

    # --- 2) out = ReLU(adj @ hidden)  (adj streamed as bf16 tiles) ----------
    out_p = pl.pallas_call(
        aggregate_kernel,
        out_shape=jax.ShapeDtypeStruct((n_pad, fout_p), jnp.float32),
        grid=(n_pad // tm, n_pad // tk),
        in_specs=[
            pl.BlockSpec((tm, tk), lambda i, k: (i, k)),        # adj tile
            pl.BlockSpec((tk, fout_p), lambda i, k: (k, 0)),    # hidden K-strip
        ],
        out_specs=pl.BlockSpec((tm, fout_p), lambda i, k: (i, 0)),
        scratch_shapes=[pltpu.VMEM((tm, fout_p), jnp.float32)],  # f32 accumulator
        compiler_params=pltpu.CompilerParams(
            dimension_semantics=("parallel", "arbitrary")
        ),
    )(adj_p, hidden)

    output = out_p[:n, :fout].astype(x.dtype)
    return output, adj


def reference(x, adj, weight, bias):
    hidden = x @ weight.T + bias
    support = adj @ hidden
    return jnp.maximum(support, 0.0)


if __name__ == "__main__":
    # Small deterministic example: N=8 nodes, in_features=32, out_features=16
    N, FIN, FOUT = 8, 32, 16
    key = jax.random.PRNGKey(0)
    kx, kadj, kw, kb = jax.random.split(key, 4)

    x = jax.random.normal(kx, (N, FIN), dtype=jnp.float32)
    adj = jax.random.uniform(kadj, (N, N), dtype=jnp.float32)
    # Deterministic Linear-style init (uniform in +/- 1/sqrt(fan_in))
    bound = 1.0 / (FIN ** 0.5)
    weight = jax.random.uniform(kw, (FOUT, FIN), minval=-bound, maxval=bound,
                                dtype=jnp.float32)
    bias = jax.random.uniform(kb, (FOUT,), minval=-bound, maxval=bound,
                              dtype=jnp.float32)

    out, adj_out = graph_convolution(x, adj, weight, bias)
    out = jax.block_until_ready(out)

    ref = reference(x, adj, weight, bias)
    assert out.shape == (N, FOUT)
    assert adj_out.shape == adj.shape
    # adj / hidden travel through bf16 inside the kernel -> loosened tolerance
    # versus the pure-f32 reference.
    assert jnp.allclose(out, ref, atol=2e-2, rtol=2e-2), float(
        jnp.max(jnp.abs(out - ref)))

    print("KERNEL_OK")
</pallas_src>

<mosaic_0001>
module attributes {stable_mosaic.version = 11 : i64} {
  func.func @linear_kernel(%arg0: i32, %arg1: memref<128x32xf32, #tpu.memory_space<vmem>>, %arg2: memref<32x128xf32, #tpu.memory_space<vmem>>, %arg3: memref<1x128xf32, #tpu.memory_space<vmem>>, %arg4: memref<128x128xbf16, #tpu.memory_space<vmem>>) attributes {dimension_semantics = [#tpu.dimension_semantics<parallel>], iteration_bounds = array<i64: 1>, scalar_prefetch = 0 : i64, scratch_operands = 0 : i64, tpu.core_type = #tpu.core_type<tc>, window_params = [{transform_indices = @transform_0, window_bounds = array<i64: 128, 32>}, {pipeline_mode = #tpu.pipeline_mode<synchronous>, transform_indices = @transform_1, window_bounds = array<i64: 32, 128>}, {pipeline_mode = #tpu.pipeline_mode<synchronous>, transform_indices = @transform_2, window_bounds = array<i64: 1, 128>}, {transform_indices = @transform_3, window_bounds = array<i64: 128, 128>}]} {
    %c0 = arith.constant 0 : index
    %c0_0 = arith.constant 0 : index
    %0 = vector.load %arg1[%c0, %c0_0] : memref<128x32xf32, #tpu.memory_space<vmem>>, vector<128x32xf32>
    %c0_1 = arith.constant 0 : index
    %c0_2 = arith.constant 0 : index
    %1 = vector.load %arg2[%c0_1, %c0_2] : memref<32x128xf32, #tpu.memory_space<vmem>>, vector<32x128xf32>
    %cst = arith.constant dense<0.000000e+00> : vector<128x128xf32>
    %2 = tpu.matmul %0, %1, %cst {dimension_numbers = #tpu.dot_dimension_numbers<[1], [0], [0], [1], [0, 0, 1, 1], [], []>} : vector<128x32xf32>, vector<32x128xf32>, vector<128x128xf32> -> vector<128x128xf32>
    %c0_3 = arith.constant 0 : index
    %c0_4 = arith.constant 0 : index
    %3 = vector.load %arg3[%c0_3, %c0_4] : memref<1x128xf32, #tpu.memory_space<vmem>>, vector<1x128xf32>
    %4 = vector.broadcast %3 : vector<1x128xf32> to vector<128x128xf32>
    %5 = arith.addf %2, %4 : vector<128x128xf32>
    %6 = arith.truncf %5 : vector<128x128xf32> to vector<128x128xbf16>
    %c0_5 = arith.constant 0 : index
    %c0_6 = arith.constant 0 : index
    %7 = vector.load %arg4[%c0_5, %c0_6] : memref<128x128xbf16, #tpu.memory_space<vmem>>, vector<128x128xbf16>
    tpu.vector_store %arg4[%c0_5, %c0_6], %6 {strides = array<i32>} : memref<128x128xbf16, #tpu.memory_space<vmem>>, vector<128x128xbf16>,
    return
  }
  func.func @transform_0(%arg0: i32) -> (i32, i32) {
    %c0_i32 = arith.constant 0 : i32
    %c0_i32_0 = arith.constant 0 : i32
    return %arg0, %c0_i32 : i32, i32
  }
  func.func @transform_1(%arg0: i32) -> (i32, i32) {
    %c0_i32 = arith.constant 0 : i32
    %c0_i32_0 = arith.constant 0 : i32
    %c0_i32_1 = arith.constant 0 : i32
    return %c0_i32, %c0_i32_0 : i32, i32
  }
  func.func @transform_2(%arg0: i32) -> (i32, i32) {
    %c0_i32 = arith.constant 0 : i32
    %c0_i32_0 = arith.constant 0 : i32
    %c0_i32_1 = arith.constant 0 : i32
    return %c0_i32, %c0_i32_0 : i32, i32
  }
  func.func @transform_3(%arg0: i32) -> (i32, i32) {
    %c0_i32 = arith.constant 0 : i32
    %c0_i32_0 = arith.constant 0 : i32
    return %arg0, %c0_i32 : i32, i32
  }
}

</mosaic_0001>

<bundles_post_ra>
// kernel: tpu_custom_call.1
= control target key start
LH: loop header
LB: loop body
LE: loop exit
PB: predicated region body
PF: predicated region fallthrough
CT: control target
= control target key end

     0   :  { %vm42_vm0 = vcmask 261120   ;;  %s618_s0 = inlined_call_operand.vmem [shape: f32[128,32], index: 0, kind: input, shape index: {}]   ;;  %s619_s1 = inlined_call_operand.vmem [shape: f32[32,128], index: 1, kind: input, shape index: {}]   ;;  %s620_s2 = inlined_call_operand.vmem [shape: f32[1,128], index: 2, kind: input, shape index: {}]   ;;  %s621_s3 = inlined_call_operand.hbm [shape: bf16[128,128], index: 3, kind: output, shape index: {}]  }
   0x1   :  { %v34_v0 = vld [vmem:[%s619_s1 + $0x18] sm:$0xff]  ;;  %v33_v1 = vld [vmem:[%s619_s1 + $0x10] sm:$0xff]  ;;  %v32_v2 = vld [vmem:[%s619_s1 + $0x8] sm:$0xff] }
   0x2   :  { %448 = vmatprep.subr.mxu0 %v34_v0  ;;  %480 = vmatprep.subr.mxu1 %v34_v0  ;;  %v31_v3 = vld [vmem:[%s619_s1] sm:$0xff] }
   0x3   :  { %449 = vmatpush3.msra.mxu0 %v34_v0  ;;  %484 = vmatpush3.msra.mxu1 %v34_v0  ;;  %v15_v4 = vld [vmem:[%s618_s0] sm:$0xff] }
   0x4   :  { %450 = vmatprep.subr.mxu0 %v33_v1  ;;  %481 = vmatprep.subr.mxu1 %v33_v1  ;;  %v23_v5 = vld [vmem:[%s618_s0 + $0x40] sm:$0xff] }
   0x5   :  { %451 = vmatpush3.msra.mxu0 %v33_v1  ;;  %485 = vmatpush3.msra.mxu1 %v33_v1 }
   0x6   :  { %452 = vmatprep.subr.mxu0 %v32_v2  ;;  %482 = vmatprep.subr.mxu1 %v32_v2 }
   0x7   :  { %453 = vmatpush3.msra.mxu0 %v32_v2  ;;  %486 = vmatpush3.msra.mxu1 %v32_v2 }
   0x8   :  { %8 = vsyncpa [#allocation3], 0  ;;  %454 = vmatprep.subr.mxu0 %v31_v3  ;;  %483 = vmatprep.subr.mxu1 %v31_v3  ;;  %v16_v6 = vld [vmem:[%s618_s0 + $0x8] sm:$0xff]  ;;  %v17_v8 = vld [vmem:[%s618_s0 + $0x10] sm:$0xff] }
   0x9   :  { %v24_v7 = vld [vmem:[%s618_s0 + $0x48] sm:$0xff]  ;;  %455 = vmatpush3.msra.mxu0 %v31_v3  ;;  %487 = vmatpush3.msra.mxu1 %v31_v3  ;;  %v25_v9 = vld [vmem:[%s618_s0 + $0x50] sm:$0xff]  ;;  %v18_v10 = vld [vmem:[%s618_s0 + $0x18] sm:$0xff] }
   0xa   :  { %456 = vmatprep.mubr.msk.f32.mxu0 %vm42_vm0, %v15_v4  ;;  %468 = vmatprep.mubr.msk.f32.mxu1 %vm42_vm0, %v23_v5  ;;  %v26_v11 = vld [vmem:[%s618_s0 + $0x58] sm:$0xff]  ;;  %v19_v12 = vld [vmem:[%s618_s0 + $0x20] sm:$0xff]  ;;  %v20_v14 = vld [vmem:[%s618_s0 + $0x28] sm:$0xff] }
   0xb   :  { %457 = vmatmul.mubr.msk.f32.vlgmr.msra.gmra.mxu0 %vm42_vm0, %v16_v6  ;;  %469 = vmatmul.mubr.msk.f32.vlgmr.msra.gmra.mxu1 %vm42_vm0, %v24_v7  ;;  %v27_v13 = vld [vmem:[%s618_s0 + $0x60] sm:$0xff]  ;;  %v28_v15 = vld [vmem:[%s618_s0 + $0x68] sm:$0xff]  ;;  %v21_v16 = vld [vmem:[%s618_s0 + $0x30] sm:$0xff] }
   0xc   :  { %459 = vmatprep.mubr.msk.f32.mxu0 %vm42_vm0, %v17_v8  ;;  %471 = vmatprep.mubr.msk.f32.mxu1 %vm42_vm0, %v25_v9  ;;  %v29_v17 = vld [vmem:[%s618_s0 + $0x70] sm:$0xff]  ;;  %v22_v18 = vld [vmem:[%s618_s0 + $0x38] sm:$0xff]  ;;  %v332_v21 = vld [vmem:[%s620_s2] ss:$0 sm:$0xff] }
   0xd   :  { %v30_v19 = vld [vmem:[%s618_s0 + $0x78] sm:$0xff]  ;;  %s513_s0 = smov [#allocation2]  }
   0xe   :  { %s321_s2 = sshll.u32 %s513_s0, 4  ;;  %s322_s2 = int_to_ptr.vmem [resolvable:$true] %s321_s2 }
   0xf   :  { %460 = vmatmul.mubr.msk.f32.gmra.mxu0 %vm42_vm0, %v18_v10  ;;  %472 = vmatmul.mubr.msk.f32.gmra.mxu1 %vm42_vm0, %v26_v11  ;;  %s491_s1 = scalar_lea.vmem %s322_s2, 1024  ;;  %p496_p1 = scmp.lt.s32.totalorder %s322_s2, %s322_s2 }
  0x10   :  { %462 = vmatprep.mubr.msk.f32.mxu0 %vm42_vm0, %v19_v12  ;;  %474 = vmatprep.mubr.msk.f32.mxu1 %vm42_vm0, %v27_v13  ;;  %p492_p0 = scmp.ne.s32.totalorder %s322_s2, %s491_s1  ;;  %p497_p2 = scmp.lt.s32.totalorder %s491_s1, %s491_s1 }
  0x12   :  { %p498_p3 = por %p497_p2, %p496_p1 }
  0x13   :  { %463 = vmatmul.mubr.msk.f32.gmra.mxu0 %vm42_vm0, %v20_v14  ;;  %475 = vmatmul.mubr.msk.f32.gmra.mxu1 %vm42_vm0, %v28_v15 }
  0x14   :  { %465 = vmatprep.mubr.msk.f32.mxu0 %vm42_vm0, %v21_v16  ;;  %477 = vmatprep.mubr.msk.f32.mxu1 %vm42_vm0, %v29_v17  ;;  %p499_p4 = pnand %p498_p3, %p492_p0 }
  0x17   :  { %466 = vmatmul.mubr.msk.f32.gmra.mxu0 %vm42_vm0, %v22_v18  ;;  %478 = vmatmul.mubr.msk.f32.gmra.mxu1 %vm42_vm0, %v30_v19 }
  0xcb   :  { %v458_v20 = vpop.f32.mrf.mxu0  ;;  %v470_v22 = vpop.f32.mrf.mxu1 }
  0xcc   :  { %v163_v25 = vadd.f32 %v458_v20, %v332_v21  ;;  %v203_v26 = vadd.f32 %v470_v22, %v332_v21 }
  0xcd   :  { %v157_v23 = vpop.f32.mrf.mxu0  ;;  %v197_v24 = vpop.f32.mrf.mxu1 }
  0xce   :  { %v158_v27 = vadd.f32 %v332_v21, %v157_v23  ;;  %v198_v28 = vadd.f32 %v332_v21, %v197_v24 }
  0xcf   :  { %v461_v29 = vpop.f32.mrf.mxu0  ;;  %v473_v30 = vpop.f32.mrf.mxu1 }
  0xd0   :  { %v384_v31 = vpack.c.bf16 %v163_v25, %v158_v27  ;;  %v404_v32 = vpack.c.bf16 %v203_v26, %v198_v28  ;;  %v173_v35 = vadd.f32 %v461_v29, %v332_v21  ;;  %v213_v36 = vadd.f32 %v473_v30, %v332_v21 }
  0xd1   :  { %v167_v33 = vpop.f32.mrf.mxu0  ;;  %v207_v34 = vpop.f32.mrf.mxu1 }
  0xd2   :  { %385 = vst [vmem:[#allocation2] sm:$0xff] %v384_v31   ;;  %424 = vst [vmem:[#allocation2 + $0x20] sm:$0xff] %v404_v32   ;;  %v168_v37 = vadd.f32 %v332_v21, %v167_v33  ;;  %v208_v38 = vadd.f32 %v332_v21, %v207_v34 }
  0xd3   :  { %v464_v39 = vpop.f32.mrf.mxu0  ;;  %v476_v40 = vpop.f32.mrf.mxu1 }
  0xd4   :  { %v389_v41 = vpack.c.bf16 %v173_v35, %v168_v37  ;;  %v409_v42 = vpack.c.bf16 %v213_v36, %v208_v38  ;;  %v183_v45 = vadd.f32 %v464_v39, %v332_v21  ;;  %v223_v46 = vadd.f32 %v476_v40, %v332_v21 }
  0xd5   :  { %v177_v43 = vpop.f32.mrf.mxu0  ;;  %v217_v44 = vpop.f32.mrf.mxu1 }
  0xd6   :  { %421 = vst [vmem:[#allocation2 + $0x8] sm:$0xff] %v389_v41   ;;  %425 = vst [vmem:[#allocation2 + $0x28] sm:$0xff] %v409_v42   ;;  %v178_v47 = vadd.f32 %v332_v21, %v177_v43  ;;  %v218_v48 = vadd.f32 %v332_v21, %v217_v44 }
  0xd7   :  { %v467_v49 = vpop.f32.mrf.mxu0  ;;  %v479_v50 = vpop.f32.mrf.mxu1 }
  0xd8   :  { %v394_v51 = vpack.c.bf16 %v183_v45, %v178_v47  ;;  %v414_v52 = vpack.c.bf16 %v223_v46, %v218_v48  ;;  %v193_v55 = vadd.f32 %v467_v49, %v332_v21  ;;  %v233_v56 = vadd.f32 %v479_v50, %v332_v21 }
  0xd9   :  { %v187_v53 = vpop.f32.mrf.mxu0  ;;  %v227_v54 = vpop.f32.mrf.mxu1 }
  0xda   :  { %422 = vst [vmem:[#allocation2 + $0x10] sm:$0xff] %v394_v51   ;;  %426 = vst [vmem:[#allocation2 + $0x30] sm:$0xff] %v414_v52   ;;  %v188_v57 = vadd.f32 %v332_v21, %v187_v53  ;;  %v228_v58 = vadd.f32 %v332_v21, %v227_v54 }
  0xdc   :  { %v399_v59 = vpack.c.bf16 %v193_v55, %v188_v57  ;;  %v419_v60 = vpack.c.bf16 %v233_v56, %v228_v58 }
  0xde   :  { %423 = vst [vmem:[#allocation2 + $0x18] sm:$0xff] %v399_v59   ;;  %427 = vst [vmem:[#allocation2 + $0x38] sm:$0xff] %v419_v60  }
  0xdf   :  { %502 = shalt.err (!%p499_p4)
}
  0xe0   :  { %s514_s26 = smov 64   ;;  %s515_s27 = smov 4  }
  0xe1   :  { %327 = dma.vmem_to_hbm [thread:$0]  %s322_s2, 1024, %s621_s3, [#allocation3], %s514_s26, %s514_s26, %s515_s27  }
  0xe2   :  { %511 = dma.done.wait [#allocation3], 1024  }
  0xe3   :  { %512 = vsyncadd [#allocation3], 4294966272 }
  0xe4   :  { %331 = vsyncpa [#allocation3], 1 }

</bundles_post_ra>
